<compile_context>
chip_gen: v7x
topology: tpu7x:2x2x1
jax: 0.10.0
libtpu: 0.0.40
codegen_flags: <defaults>
</compile_context>

<pallas_src>
import functools

import jax
import jax.numpy as jnp
from jax.experimental import pallas as pl
from jax.experimental.pallas import tpu as pltpu

_LANES = 128
_SUBLANES = 8
_ROW_ALIGN = 32          # rows padded to x32 so int8 mask tiles stay (32,128)-aligned
_MAX_BLOCK_ROWS = 4096   # (4096, 128) f32 tile = 2 MiB per input per grid step
_FORCE_NUM_SPLITS = None  # override the TensorCore-count autodetection if desired


@functools.lru_cache(maxsize=None)
def _num_tensorcores():
    """Best-effort TensorCore-per-device count (v7x: 2, v5e/v6e: 1)."""
    try:
        dev = jax.devices()[0]
        v = getattr(dev, "num_cores", None)
        if v:
            return max(1, int(v))
    except Exception:
        pass
    try:
        info = pltpu.get_tpu_info()
        for attr in ("num_cores", "tensorcores_per_chip", "num_tensorcores"):
            v = getattr(info, attr, None)
            if v:
                return max(1, int(v))
    except Exception:
        pass
    return 1


def _tail_valid_mask(base, block_rows, n_valid):
    """Validity mask (flat index < n_valid) for a block starting at `base`."""
    row_ids = jax.lax.broadcasted_iota(jnp.int32, (block_rows, _LANES), 0)
    lane_ids = jax.lax.broadcasted_iota(jnp.int32, (block_rows, _LANES), 1)
    return (base + row_ids * _LANES + lane_ids) < n_valid


def _silog_kernel_nomask(x_ref, t_ref, sum_ref, sumsq_ref, *,
                         n_valid, block_rows, steps_per_core):
    c = pl.program_id(0)
    i = pl.program_id(1)

    @pl.when(i == 0)
    def _():
        sum_ref[...] = jnp.zeros_like(sum_ref)
        sumsq_ref[...] = jnp.zeros_like(sumsq_ref)

    block_elems = block_rows * _LANES
    base = (c * steps_per_core + i) * block_elems
    k = block_rows // _SUBLANES

    def accumulate(g):
        # vreg-wise adds into the resident (8,128) partials; the tiny
        # cross-lane reduce happens once in the JAX wrapper.
        g3 = g.reshape(k, _SUBLANES, _LANES)
        sum_ref[...] += jnp.sum(g3, axis=0)
        sumsq_ref[...] += jnp.sum(g3 * g3, axis=0)

    needs_tail = base + block_elems > n_valid

    @pl.when(jnp.logical_not(needs_tail))
    def _():  # fast path: interior block -> no iota, no selects
        accumulate(jnp.log(x_ref[...].astype(jnp.float32))
                   - jnp.log(t_ref[...].astype(jnp.float32)))

    @pl.when(needs_tail)
    def _():  # last / padded / clamped-overflow block
        valid = _tail_valid_mask(base, block_rows, n_valid)
        x = jnp.where(valid, x_ref[...].astype(jnp.float32), 1.0)
        t = jnp.where(valid, t_ref[...].astype(jnp.float32), 1.0)
        accumulate(jnp.log(x) - jnp.log(t))  # exactly 0 on masked elements


def _silog_kernel_mask(x_ref, t_ref, m_ref, sum_ref, sumsq_ref, cnt_ref, *,
                       n_valid, block_rows, steps_per_core):
    c = pl.program_id(0)
    i = pl.program_id(1)

    @pl.when(i == 0)
    def _():
        sum_ref[...] = jnp.zeros_like(sum_ref)
        sumsq_ref[...] = jnp.zeros_like(sumsq_ref)
        cnt_ref[...] = jnp.zeros_like(cnt_ref)

    block_elems = block_rows * _LANES
    base = (c * steps_per_core + i) * block_elems
    k = block_rows // _SUBLANES

    def accumulate(valid):
        # masked-select semantics: log() is never taken on dropped elements
        x = jnp.where(valid, x_ref[...].astype(jnp.float32), 1.0)
        t = jnp.where(valid, t_ref[...].astype(jnp.float32), 1.0)
        g = jnp.log(x) - jnp.log(t)
        vf = valid.astype(jnp.float32)
        g3 = g.reshape(k, _SUBLANES, _LANES)
        v3 = vf.reshape(k, _SUBLANES, _LANES)
        sum_ref[...] += jnp.sum(g3, axis=0)
        sumsq_ref[...] += jnp.sum(g3 * g3, axis=0)
        cnt_ref[...] += jnp.sum(v3, axis=0)

    user_valid = m_ref[...] != 0  # int8 mask stream (4x smaller than f32)
    needs_tail = base + block_elems > n_valid

    @pl.when(jnp.logical_not(needs_tail))
    def _():  # interior block: only the user mask matters
        accumulate(user_valid)

    @pl.when(needs_tail)
    def _():  # fold the element-validity tail mask into the user mask
        accumulate(user_valid & _tail_valid_mask(base, block_rows, n_valid))


def _silog_partial_sums(x2d, t2d, m2d, n_valid):
    """Run the Pallas reduction; returns (sum g, sum g^2, valid count)."""
    rows = x2d.shape[0]                    # always a multiple of _ROW_ALIGN
    block_rows = min(_MAX_BLOCK_ROWS, rows)
    total_blocks = pl.cdiv(rows, block_rows)

    num_cores = _FORCE_NUM_SPLITS or _num_tensorcores()
    # Only split when there are really >1 TensorCores (v7x); on v5e/v6e a
    # split would just be a serial outer loop plus duplicated clamped blocks.
    num_splits = num_cores if (num_cores > 1 and total_blocks >= num_cores) else 1
    steps = pl.cdiv(total_blocks, num_splits)

    def in_map(c, i):
        # Overflow steps on the last core (total_blocks % num_splits != 0) are
        # clamped to the last real block and fully tail-masked in-kernel.
        return (jnp.minimum(c * steps + i, total_blocks - 1), 0)

    in_blk = pl.BlockSpec((block_rows, _LANES), in_map)
    out_blk = pl.BlockSpec((None, _SUBLANES, _LANES), lambda c, i: (c, 0, 0))
    out_sds = jax.ShapeDtypeStruct((num_splits, _SUBLANES, _LANES), jnp.float32)

    if num_splits > 1:
        sems = (pltpu.CORE_PARALLEL, pltpu.ARBITRARY)   # real per-TC split (v7x)
    else:
        sems = (pltpu.ARBITRARY, pltpu.ARBITRARY)
    cparams = pltpu.CompilerParams(dimension_semantics=sems)

    if m2d is None:
        kern = functools.partial(_silog_kernel_nomask, n_valid=n_valid,
                                 block_rows=block_rows, steps_per_core=steps)
        s_p, sq_p = pl.pallas_call(
            kern,
            out_shape=(out_sds, out_sds),
            grid_spec=pltpu.PrefetchScalarGridSpec(
                num_scalar_prefetch=0,
                grid=(num_splits, steps),
                in_specs=[in_blk, in_blk],
                out_specs=[out_blk, out_blk]),
            compiler_params=cparams,
        )(x2d, t2d)
        return jnp.sum(s_p), jnp.sum(sq_p), jnp.float32(n_valid)

    kern = functools.partial(_silog_kernel_mask, n_valid=n_valid,
                             block_rows=block_rows, steps_per_core=steps)
    s_p, sq_p, c_p = pl.pallas_call(
        kern,
        out_shape=(out_sds, out_sds, out_sds),
        grid_spec=pltpu.PrefetchScalarGridSpec(
            num_scalar_prefetch=0,
            grid=(num_splits, steps),
            in_specs=[in_blk, in_blk, in_blk],
            out_specs=[out_blk, out_blk, out_blk]),
        compiler_params=cparams,
    )(x2d, t2d, m2d)
    return jnp.sum(s_p), jnp.sum(sq_p), jnp.sum(c_p)


def _as_lane_major_2d(x, pad_value, dtype=None):
    """Flatten to (rows, 128) with rows % 32 == 0 (int8-friendly tiling).

    Free (bitcast reshape) when numel % 4096 == 0; otherwise a minimal pad
    copy is made (pad region is excluded in-kernel anyway).
    """
    flat = jnp.ravel(x)
    if dtype is not None and flat.dtype != dtype:
        flat = flat.astype(dtype)
    n = flat.shape[0]
    rows = pl.cdiv(n, _LANES)
    rows = pl.cdiv(rows, _ROW_ALIGN) * _ROW_ALIGN
    total = rows * _LANES
    if total != n:
        # TODO(synk): replace with aligned-prefix kernel + plain-JAX tail.
        flat = jnp.pad(flat, (0, total - n), constant_values=pad_value)
    return flat.reshape(rows, _LANES)


def _bilinear_align_corners(x, out_hw):
    """F.interpolate(x, out_hw, mode='bilinear', align_corners=True), NCHW.

    Separable (H pass then W pass) to keep full-size HBM intermediates to ~1
    per pass instead of 4-6 with the joint gather formulation.
    """
    n, c, h, w = x.shape
    out_h, out_w = int(out_hw[0]), int(out_hw[1])
    if (h, w) == (out_h, out_w):
        return x
    dt = x.dtype

    def axis_coords(in_size, out_size):
        if out_size > 1:
            src = jnp.linspace(0.0, in_size - 1.0, out_size, dtype=jnp.float32)
        else:
            src = jnp.zeros((out_size,), jnp.float32)
        lo = jnp.floor(src).astype(jnp.int32)
        hi = jnp.minimum(lo + 1, in_size - 1)
        frac = src - lo.astype(jnp.float32)
        return lo, hi, frac

    if out_h != h:
        y0, y1, wy = axis_coords(h, out_h)
        wy = wy.astype(dt)[:, None]                      # (out_h, 1)
        x = x[:, :, y0, :] * (1 - wy) + x[:, :, y1, :] * wy
    if out_w != w:
        x0, x1, wx = axis_coords(w, out_w)
        wx = wx.astype(dt)[None, :]                      # (1, out_w)
        x = x[:, :, :, x0] * (1 - wx) + x[:, :, :, x1] * wx
    return x


@functools.partial(jax.jit, static_argnames=("interpolate",))
def _silog_loss_impl(inputs, target, mask, interpolate):
    if interpolate:
        # TODO(synk): fuse into the Pallas kernel via scalar-prefetched indices.
        inputs = _bilinear_align_corners(inputs, target.shape[-2:])

    n_valid = int(target.size)  # static at trace time
    # No dtype widening before the HBM boundary: stream caller dtype, cast
    # per-tile inside the kernel; mask goes across as int8.
    x2d = _as_lane_major_2d(inputs, 1.0)
    t2d = _as_lane_major_2d(target, 1.0)
    m2d = None if mask is None else _as_lane_major_2d(mask, 0, dtype=jnp.int8)

    s, sq, n = _silog_partial_sums(x2d, t2d, m2d, n_valid)

    n = jnp.maximum(n, 1.0)                       # guard count == 0
    mean_g = s / n
    # torch.var default is unbiased (correction=1); guard count <= 1 and clamp
    # the cancellation-prone E[X^2]-E[X]^2 form before sqrt.
    var_g = (sq - s * s / n) / jnp.maximum(n - 1.0, 1.0)
    dg = jnp.maximum(var_g + 0.15 * mean_g * mean_g, 0.0)
    return 10.0 * jnp.sqrt(dg)


def silog_loss(inputs, target, mask=None, interpolate=True):
    """SILogLoss.forward: 10*sqrt(var(g) + 0.15*mean(g)^2), g = log(in)-log(tgt)."""
    return _silog_loss_impl(inputs, target, mask, interpolate=interpolate)


if __name__ == "__main__":
    key = jax.random.PRNGKey(0)
    k1, k2, k3, k4, k5, k6 = jax.random.split(key, 6)

    def ref_loss(g):
        dg = jnp.var(g, ddof=1) + 0.15 * jnp.mean(g) ** 2
        return 10.0 * jnp.sqrt(dg)

    def ref_loss_masked(g, m):
        mf = m.astype(jnp.float32)
        nm = jnp.sum(mf)
        mean_m = jnp.sum(g * mf) / nm
        var_m = jnp.sum((g - mean_m) ** 2 * mf) / (nm - 1.0)
        return 10.0 * jnp.sqrt(var_m + 0.15 * mean_m ** 2)

    # --- 1. small case (typical module usage; exercises the bilinear resize)
    inp = jax.random.uniform(k1, (2, 4, 8, 8), jnp.float32, minval=0.1, maxval=2.0)
    tgt = jax.random.uniform(k2, (2, 4, 16, 16), jnp.float32, minval=0.1, maxval=2.0)
    loss = silog_loss(inp, tgt, mask=None, interpolate=True)
    jax.block_until_ready(loss)
    g_ref = jnp.log(_bilinear_align_corners(inp, (16, 16))) - jnp.log(tgt)
    ref = ref_loss(g_ref)
    assert jnp.allclose(loss, ref, rtol=1e-3, atol=1e-4), (loss, ref)

    # --- 2. ragged element count (pad path) + masked kernel variant --------
    inp2 = jax.random.uniform(k3, (2, 3, 105, 106), jnp.float32, minval=0.1, maxval=2.0)
    tgt2 = jax.random.uniform(k4, (2, 3, 210, 212), jnp.float32, minval=0.1, maxval=2.0)
    mask2 = tgt2 > 0.7
    loss2 = silog_loss(inp2, tgt2, mask=None, interpolate=True)
    loss2m = silog_loss(inp2, tgt2, mask=mask2, interpolate=True)
    jax.block_until_ready((loss2, loss2m))
    g2 = jnp.log(_bilinear_align_corners(inp2, (210, 212))) - jnp.log(tgt2)
    ref2 = ref_loss(g2)
    ref2m = ref_loss_masked(g2, mask2)
    assert jnp.allclose(loss2, ref2, rtol=1e-3, atol=1e-4), (loss2, ref2)
    assert jnp.allclose(loss2m, ref2m, rtol=1e-3, atol=1e-4), (loss2m, ref2m)

    # --- 3. multi-block grid: free reshape (no pad), interior fast-path block
    #        + tail-masked partial edge block, with and without mask ---------
    inp3 = jax.random.uniform(k5, (1, 3, 256, 212), jnp.float32, minval=0.1, maxval=2.0)
    tgt3 = jax.random.uniform(k6, (1, 3, 512, 424), jnp.float32, minval=0.1, maxval=2.0)
    mask3 = tgt3 > 0.9
    loss3 = silog_loss(inp3, tgt3, mask=None, interpolate=True)
    loss3m = silog_loss(inp3, tgt3, mask=mask3, interpolate=True)
    jax.block_until_ready((loss3, loss3m))
    g3 = jnp.log(_bilinear_align_corners(inp3, (512, 424))) - jnp.log(tgt3)
    ref3 = ref_loss(g3)
    ref3m = ref_loss_masked(g3, mask3)
    assert jnp.allclose(loss3, ref3, rtol=1e-3, atol=1e-4), (loss3, ref3)
    assert jnp.allclose(loss3m, ref3m, rtol=1e-3, atol=1e-4), (loss3m, ref3m)

    # --- 4. bf16 smoke test: inputs stream at half width, cast per-tile -----
    loss_bf16 = silog_loss(inp.astype(jnp.bfloat16), tgt.astype(jnp.bfloat16),
                           mask=None, interpolate=True)
    jax.block_until_ready(loss_bf16)
    assert jnp.isfinite(loss_bf16)
    assert jnp.allclose(loss_bf16, ref, rtol=1e-1), (loss_bf16, ref)

    print("KERNEL_OK")
</pallas_src>

<mosaic_0001>
module attributes {stable_mosaic.version = 11 : i64} {
  func.func @_silog_kernel_nomask(%arg0: i32, %arg1: i32, %arg2: memref<32x128xf32, #tpu.memory_space<vmem>>, %arg3: memref<32x128xf32, #tpu.memory_space<vmem>>, %arg4: memref<1x8x128xf32, #tpu.memory_space<vmem>>, %arg5: memref<1x8x128xf32, #tpu.memory_space<vmem>>) attributes {dimension_semantics = [#tpu.dimension_semantics<arbitrary>, #tpu.dimension_semantics<arbitrary>], iteration_bounds = array<i64: 1, 1>, scalar_prefetch = 0 : i64, scratch_operands = 0 : i64, tpu.core_type = #tpu.core_type<tc>, window_params = [{transform_indices = @transform_0, window_bounds = array<i64: 32, 128>}, {transform_indices = @transform_1, window_bounds = array<i64: 32, 128>}, {transform_indices = @transform_2, window_bounds = array<i64: 1, 8, 128>}, {transform_indices = @transform_3, window_bounds = array<i64: 1, 8, 128>}]} {
    %c0_i32 = arith.constant 0 : i32
    %0 = arith.cmpi eq, %arg1, %c0_i32 : i32
    %1 = arith.extui %0 : i1 to i32
    %c0_i32_0 = arith.constant 0 : i32
    %2 = arith.cmpi ne, %1, %c0_i32_0 : i32
    scf.if %2 {
      %cst = arith.constant 0.000000e+00 : f32
      %13 = vector.broadcast %cst : f32 to vector<8x128xf32>
      %c0 = arith.constant 0 : index
      %c0_4 = arith.constant 0 : index
      %c0_5 = arith.constant 0 : index
      %14 = vector.load %arg4[%c0, %c0_4, %c0_5] : memref<1x8x128xf32, #tpu.memory_space<vmem>>, vector<1x8x128xf32>
      %15 = vector.shape_cast %14 : vector<1x8x128xf32> to vector<8x128xf32>
      %16 = vector.shape_cast %13 : vector<8x128xf32> to vector<1x8x128xf32>
      tpu.vector_store %arg4[%c0, %c0_4, %c0_5], %16 {strides = array<i32>} : memref<1x8x128xf32, #tpu.memory_space<vmem>>, vector<1x8x128xf32>,
      %cst_6 = arith.constant 0.000000e+00 : f32
      %17 = vector.broadcast %cst_6 : f32 to vector<8x128xf32>
      %c0_7 = arith.constant 0 : index
      %c0_8 = arith.constant 0 : index
      %c0_9 = arith.constant 0 : index
      %18 = vector.load %arg5[%c0_7, %c0_8, %c0_9] : memref<1x8x128xf32, #tpu.memory_space<vmem>>, vector<1x8x128xf32>
      %19 = vector.shape_cast %18 : vector<1x8x128xf32> to vector<8x128xf32>
      %20 = vector.shape_cast %17 : vector<8x128xf32> to vector<1x8x128xf32>
      tpu.vector_store %arg5[%c0_7, %c0_8, %c0_9], %20 {strides = array<i32>} : memref<1x8x128xf32, #tpu.memory_space<vmem>>, vector<1x8x128xf32>,
    } else {
    }
    %c1_i32 = arith.constant 1 : i32
    %3 = arith.muli %arg0, %c1_i32 : i32
    %4 = arith.addi %3, %arg1 : i32
    %c4096_i32 = arith.constant 4096 : i32
    %5 = arith.muli %4, %c4096_i32 : i32
    %c4096_i32_1 = arith.constant 4096 : i32
    %6 = arith.addi %5, %c4096_i32_1 : i32
    %c2048_i32 = arith.constant 2048 : i32
    %7 = arith.cmpi sgt, %6, %c2048_i32 : i32
    %true = arith.constant true
    %8 = arith.xori %7, %true : i1
    %9 = arith.extui %8 : i1 to i32
    %c0_i32_2 = arith.constant 0 : i32
    %10 = arith.cmpi ne, %9, %c0_i32_2 : i32
    scf.if %10 {
      %c0 = arith.constant 0 : index
      %c0_4 = arith.constant 0 : index
      %13 = vector.load %arg2[%c0, %c0_4] : memref<32x128xf32, #tpu.memory_space<vmem>>, vector<32x128xf32>
      %14 = math.log %13 : vector<32x128xf32>
      %c0_5 = arith.constant 0 : index
      %c0_6 = arith.constant 0 : index
      %15 = vector.load %arg3[%c0_5, %c0_6] : memref<32x128xf32, #tpu.memory_space<vmem>>, vector<32x128xf32>
      %16 = math.log %15 : vector<32x128xf32>
      %17 = arith.subf %14, %16 : vector<32x128xf32>
      %18 = vector.shape_cast %17 : vector<32x128xf32> to vector<4x8x128xf32>
      %c0_7 = arith.constant 0 : index
      %c0_8 = arith.constant 0 : index
      %c0_9 = arith.constant 0 : index
      %19 = vector.load %arg4[%c0_7, %c0_8, %c0_9] : memref<1x8x128xf32, #tpu.memory_space<vmem>>, vector<1x8x128xf32>
      %20 = vector.shape_cast %19 : vector<1x8x128xf32> to vector<8x128xf32>
      %cst = arith.constant dense<0.000000e+00> : vector<8x128xf32>
      %21 = vector.multi_reduction <add>, %18, %cst [0] : vector<4x8x128xf32> to vector<8x128xf32>
      %22 = arith.addf %20, %21 : vector<8x128xf32>
      %c0_10 = arith.constant 0 : index
      %c0_11 = arith.constant 0 : index
      %c0_12 = arith.constant 0 : index
      %23 = vector.load %arg4[%c0_10, %c0_11, %c0_12] : memref<1x8x128xf32, #tpu.memory_space<vmem>>, vector<1x8x128xf32>
      %24 = vector.shape_cast %23 : vector<1x8x128xf32> to vector<8x128xf32>
      %25 = vector.shape_cast %22 : vector<8x128xf32> to vector<1x8x128xf32>
      tpu.vector_store %arg4[%c0_10, %c0_11, %c0_12], %25 {strides = array<i32>} : memref<1x8x128xf32, #tpu.memory_space<vmem>>, vector<1x8x128xf32>,
      %c0_13 = arith.constant 0 : index
      %c0_14 = arith.constant 0 : index
      %c0_15 = arith.constant 0 : index
      %26 = vector.load %arg5[%c0_13, %c0_14, %c0_15] : memref<1x8x128xf32, #tpu.memory_space<vmem>>, vector<1x8x128xf32>
      %27 = vector.shape_cast %26 : vector<1x8x128xf32> to vector<8x128xf32>
      %28 = arith.mulf %18, %18 : vector<4x8x128xf32>
      %cst_16 = arith.constant dense<0.000000e+00> : vector<8x128xf32>
      %29 = vector.multi_reduction <add>, %28, %cst_16 [0] : vector<4x8x128xf32> to vector<8x128xf32>
      %30 = arith.addf %27, %29 : vector<8x128xf32>
      %c0_17 = arith.constant 0 : index
      %c0_18 = arith.constant 0 : index
      %c0_19 = arith.constant 0 : index
      %31 = vector.load %arg5[%c0_17, %c0_18, %c0_19] : memref<1x8x128xf32, #tpu.memory_space<vmem>>, vector<1x8x128xf32>
      %32 = vector.shape_cast %31 : vector<1x8x128xf32> to vector<8x128xf32>
      %33 = vector.shape_cast %30 : vector<8x128xf32> to vector<1x8x128xf32>
      tpu.vector_store %arg5[%c0_17, %c0_18, %c0_19], %33 {strides = array<i32>} : memref<1x8x128xf32, #tpu.memory_space<vmem>>, vector<1x8x128xf32>,
    } else {
    }
    %11 = arith.extui %7 : i1 to i32
    %c0_i32_3 = arith.constant 0 : i32
    %12 = arith.cmpi ne, %11, %c0_i32_3 : i32
    scf.if %12 {
      %13 = tpu.iota {dimensions = array<i32: 0>} : vector<32x128xi32>
      %14 = tpu.iota {dimensions = array<i32: 1>} : vector<32x128xi32>
      %c128_i32 = arith.constant 128 : i32
      %15 = vector.broadcast %c128_i32 : i32 to vector<32x128xi32>
      %16 = arith.muli %13, %15 : vector<32x128xi32>
      %17 = vector.broadcast %5 : i32 to vector<32x128xi32>
      %18 = arith.addi %17, %16 : vector<32x128xi32>
      %19 = arith.addi %18, %14 : vector<32x128xi32>
      %c2048_i32_4 = arith.constant 2048 : i32
      %20 = vector.broadcast %c2048_i32_4 : i32 to vector<32x128xi32>
      %21 = arith.cmpi slt, %19, %20 : vector<32x128xi32>
      %c0 = arith.constant 0 : index
      %c0_5 = arith.constant 0 : index
      %22 = vector.load %arg2[%c0, %c0_5] : memref<32x128xf32, #tpu.memory_space<vmem>>, vector<32x128xf32>
      %cst = arith.constant 1.000000e+00 : f32
      %23 = vector.broadcast %cst : f32 to vector<32x128xf32>
      %24 = arith.select %21, %22, %23 : vector<32x128xi1>, vector<32x128xf32>
      %c0_6 = arith.constant 0 : index
      %c0_7 = arith.constant 0 : index
      %25 = vector.load %arg3[%c0_6, %c0_7] : memref<32x128xf32, #tpu.memory_space<vmem>>, vector<32x128xf32>
      %cst_8 = arith.constant 1.000000e+00 : f32
      %26 = vector.broadcast %cst_8 : f32 to vector<32x128xf32>
      %27 = arith.select %21, %25, %26 : vector<32x128xi1>, vector<32x128xf32>
      %28 = math.log %24 : vector<32x128xf32>
      %29 = math.log %27 : vector<32x128xf32>
      %30 = arith.subf %28, %29 : vector<32x128xf32>
      %31 = vector.shape_cast %30 : vector<32x128xf32> to vector<4x8x128xf32>
      %c0_9 = arith.constant 0 : index
      %c0_10 = arith.constant 0 : index
      %c0_11 = arith.constant 0 : index
      %32 = vector.load %arg4[%c0_9, %c0_10, %c0_11] : memref<1x8x128xf32, #tpu.memory_space<vmem>>, vector<1x8x128xf32>
      %33 = vector.shape_cast %32 : vector<1x8x128xf32> to vector<8x128xf32>
      %cst_12 = arith.constant dense<0.000000e+00> : vector<8x128xf32>
      %34 = vector.multi_reduction <add>, %31, %cst_12 [0] : vector<4x8x128xf32> to vector<8x128xf32>
      %35 = arith.addf %33, %34 : vector<8x128xf32>
      %c0_13 = arith.constant 0 : index
      %c0_14 = arith.constant 0 : index
      %c0_15 = arith.constant 0 : index
      %36 = vector.load %arg4[%c0_13, %c0_14, %c0_15] : memref<1x8x128xf32, #tpu.memory_space<vmem>>, vector<1x8x128xf32>
      %37 = vector.shape_cast %36 : vector<1x8x128xf32> to vector<8x128xf32>
      %38 = vector.shape_cast %35 : vector<8x128xf32> to vector<1x8x128xf32>
      tpu.vector_store %arg4[%c0_13, %c0_14, %c0_15], %38 {strides = array<i32>} : memref<1x8x128xf32, #tpu.memory_space<vmem>>, vector<1x8x128xf32>,
      %c0_16 = arith.constant 0 : index
      %c0_17 = arith.constant 0 : index
      %c0_18 = arith.constant 0 : index
      %39 = vector.load %arg5[%c0_16, %c0_17, %c0_18] : memref<1x8x128xf32, #tpu.memory_space<vmem>>, vector<1x8x128xf32>
      %40 = vector.shape_cast %39 : vector<1x8x128xf32> to vector<8x128xf32>
      %41 = arith.mulf %31, %31 : vector<4x8x128xf32>
      %cst_19 = arith.constant dense<0.000000e+00> : vector<8x128xf32>
      %42 = vector.multi_reduction <add>, %41, %cst_19 [0] : vector<4x8x128xf32> to vector<8x128xf32>
      %43 = arith.addf %40, %42 : vector<8x128xf32>
      %c0_20 = arith.constant 0 : index
      %c0_21 = arith.constant 0 : index
      %c0_22 = arith.constant 0 : index
      %44 = vector.load %arg5[%c0_20, %c0_21, %c0_22] : memref<1x8x128xf32, #tpu.memory_space<vmem>>, vector<1x8x128xf32>
      %45 = vector.shape_cast %44 : vector<1x8x128xf32> to vector<8x128xf32>
      %46 = vector.shape_cast %43 : vector<8x128xf32> to vector<1x8x128xf32>
      tpu.vector_store %arg5[%c0_20, %c0_21, %c0_22], %46 {strides = array<i32>} : memref<1x8x128xf32, #tpu.memory_space<vmem>>, vector<1x8x128xf32>,
    } else {
    }
    return
  }
  func.func @transform_0(%arg0: i32, %arg1: i32) -> (i32, i32) {
    %c1_i32 = arith.constant 1 : i32
    %0 = arith.muli %arg0, %c1_i32 : i32
    %1 = arith.addi %0, %arg1 : i32
    %c0_i32 = arith.constant 0 : i32
    %2 = arith.minsi %1, %c0_i32 : i32
    %c0_i32_0 = arith.constant 0 : i32
    %c0_i32_1 = arith.constant 0 : i32
    return %2, %c0_i32_0 : i32, i32
  }
  func.func @transform_1(%arg0: i32, %arg1: i32) -> (i32, i32) {
    %c1_i32 = arith.constant 1 : i32
    %0 = arith.muli %arg0, %c1_i32 : i32
    %1 = arith.addi %0, %arg1 : i32
    %c0_i32 = arith.constant 0 : i32
    %2 = arith.minsi %1, %c0_i32 : i32
    %c0_i32_0 = arith.constant 0 : i32
    %c0_i32_1 = arith.constant 0 : i32
    return %2, %c0_i32_0 : i32, i32
  }
  func.func @transform_2(%arg0: i32, %arg1: i32) -> (i32, i32, i32) {
    %c0_i32 = arith.constant 0 : i32
    %c0_i32_0 = arith.constant 0 : i32
    %c0_i32_1 = arith.constant 0 : i32
    return %arg0, %c0_i32, %c0_i32_0 : i32, i32, i32
  }
  func.func @transform_3(%arg0: i32, %arg1: i32) -> (i32, i32, i32) {
    %c0_i32 = arith.constant 0 : i32
    %c0_i32_0 = arith.constant 0 : i32
    %c0_i32_1 = arith.constant 0 : i32
    return %arg0, %c0_i32, %c0_i32_0 : i32, i32, i32
  }
}

</mosaic_0001>

<bundles_post_ra>
// kernel: _silog_loss_impl.1
= control target key start
LH: loop header
LB: loop body
LE: loop exit
PB: predicated region body
PF: predicated region fallthrough
CT: control target
= control target key end

     0   :  { %v138_v0 = vlaneseq  ;;  %s303_s0 = inlined_call_operand.vmem [shape: f32[32,128], index: 0, kind: input, shape index: {}]   ;;  %s304_s1 = inlined_call_operand.vmem [shape: f32[32,128], index: 1, kind: input, shape index: {}]   ;;  %s305_s2 = inlined_call_operand.vmem [shape: f32[1,8,128], index: 2, kind: output, shape index: {0}]   ;;  %s306_s3 = inlined_call_operand.vmem [shape: f32[1,8,128], index: 3, kind: output, shape index: {1}]  }
   0x1   :  { %v162_v10 = vld [vmem:[%s303_s0] sm:$0xff]  ;;  %v163_v14 = vld [vmem:[%s303_s0 + $0x8] sm:$0xff]  ;;  %v164_v15 = vld [vmem:[%s303_s0 + $0x10] sm:$0xff] }
   0x2   :  { %v139_v1 = vshrl.u32 %v138_v0, 7  ;;  %v144_v2 = vand.u32 127, %v138_v0  ;;  %v165_v17 = vld [vmem:[%s303_s0 + $0x18] sm:$0xff]  ;;  %v170_v19 = vld [vmem:[%s304_s1] sm:$0xff]  ;;  %v171_v20 = vld [vmem:[%s304_s1 + $0x8] sm:$0xff] }
   0x3   :  { %v172_v23 = vld [vmem:[%s304_s1 + $0x10] sm:$0xff]  ;;  %v173_v25 = vld [vmem:[%s304_s1 + $0x18] sm:$0xff] }
   0x4   :  { %v140_v3 = vadd.s32 8, %v139_v1  ;;  %v141_v4 = vadd.s32 16, %v139_v1  ;;  %v142_v5 = vadd.s32 24, %v139_v1  ;;  %v145_v6 = vmul.u32 128, %v139_v1 }
   0x6   :  { %v146_v7 = vmul.u32 128, %v140_v3  ;;  %v147_v8 = vmul.u32 128, %v141_v4  ;;  %v154_v9 = vadd.s32 %v145_v6, %v144_v2 }
   0x7   :  { %v148_v11 = vmul.u32 128, %v142_v5 }
   0x8   :  { %v155_v12 = vadd.s32 %v146_v7, %v144_v2  ;;  %v156_v13 = vadd.s32 %v147_v8, %v144_v2  ;;  %vm158_vm0 = vcmp.lt.s32.totalorder %v154_v9, 2048 }
   0x9   :  { %v157_v16 = vadd.s32 %v148_v11, %v144_v2  ;;  %v166_v18 = vsel %vm158_vm0, %v162_v10, 1.0  ;;  %v174_v26 = vsel %vm158_vm0, %v170_v19, 1.0 }
   0xa   :  { %vm159_vm1 = vcmp.lt.s32.totalorder %v155_v12, 2048  ;;  %vm160_vm2 = vcmp.lt.s32.totalorder %v156_v13, 2048  ;;  %235 = vlog2.f32 %v166_v18 }
   0xb   :  { %vm161_vm3 = vcmp.lt.s32.totalorder %v157_v16, 2048  ;;  %v167_v21 = vsel %vm159_vm1, %v163_v14, 1.0  ;;  %v168_v22 = vsel %vm160_vm2, %v164_v15, 1.0  ;;  %v175_v27 = vsel %vm159_vm1, %v171_v20, 1.0 }
   0xc   :  { %v169_v24 = vsel %vm161_vm3, %v165_v17, 1.0  ;;  %237 = vlog2.f32 %v167_v21  ;;  %v176_v28 = vsel %vm160_vm2, %v172_v23, 1.0  ;;  %v177_v29 = vsel %vm161_vm3, %v173_v25, 1.0 }
   0xd   :  { %239 = vlog2.f32 %v168_v22 }
   0xe   :  { %241 = vlog2.f32 %v169_v24 }
   0xf   :  { %243 = vlog2.f32 %v174_v26 }
  0x10   :  { %245 = vlog2.f32 %v175_v27 }
  0x11   :  { %247 = vlog2.f32 %v176_v28 }
  0x12   :  { %249 = vlog2.f32 %v177_v29 }
  0x14   :  { %v236_v30 = vpop.eup %235 }
  0x15   :  { %v179_v34 = vmul.f32 0.6931472, %v236_v30 }
  0x16   :  { %v238_v31 = vpop.eup %237 }
  0x17   :  { %v240_v32 = vpop.eup %239  ;;  %v181_v36 = vmul.f32 0.6931472, %v238_v31 }
  0x18   :  { %v242_v33 = vpop.eup %241  ;;  %v183_v38 = vmul.f32 0.6931472, %v240_v32 }
  0x19   :  { %v244_v35 = vpop.eup %243  ;;  %v185_v41 = vmul.f32 0.6931472, %v242_v33 }
  0x1a   :  { %v246_v37 = vpop.eup %245  ;;  %v187_v39 = vmul.f32 0.6931472, %v244_v35 }
  0x1b   :  { %v248_v40 = vpop.eup %247  ;;  %v189_v42 = vmul.f32 0.6931472, %v246_v37 }
  0x1c   :  { %v250_v43 = vpop.eup %249  ;;  %v191_v44 = vmul.f32 0.6931472, %v248_v40  ;;  %v194_v45 = vsub.f32 %v179_v34, %v187_v39 }
  0x1d   :  { %v193_v46 = vmul.f32 0.6931472, %v250_v43  ;;  %v195_v47 = vsub.f32 %v181_v36, %v189_v42 }
  0x1e   :  { %v196_v48 = vsub.f32 %v183_v38, %v191_v44  ;;  %v205_v49 = vmul.f32 %v194_v45, %v194_v45 }
  0x1f   :  { %v197_v50 = vsub.f32 %v185_v41, %v193_v46  ;;  %v199_v51 = vadd.f32 %v195_v47, %v194_v45  ;;  %v206_v52 = vmul.f32 %v195_v47, %v195_v47 }
  0x20   :  { %v207_v53 = vmul.f32 %v196_v48, %v196_v48 }
  0x21   :  { %v200_v54 = vadd.f32 %v199_v51, %v196_v48  ;;  %v208_v55 = vmul.f32 %v197_v50, %v197_v50  ;;  %v209_v56 = vadd.f32 %v206_v52, %v205_v49 }
  0x23   :  { %v201_v57 = vadd.f32 %v200_v54, %v197_v50  ;;  %v210_v58 = vadd.f32 %v209_v56, %v207_v53 }
  0x25   :  { %v211_v59 = vadd.f32 %v210_v58, %v208_v55  ;;  %203 = vst [vmem:[%s305_s2] sm:$0xff] %v201_v57 }
  0x27   :  { %213 = vst [vmem:[%s306_s3] sm:$0xff] %v211_v59 }

</bundles_post_ra>
